<compile_context>
chip_gen: v6e
topology: v6e:2x2x1
jax: 0.10.0
libtpu: 0.0.40
codegen_flags: <defaults>
</compile_context>

<pallas_src>
import jax
import jax.numpy as jnp
from jax.experimental import pallas as pl
from jax.experimental.pallas import tpu as pltpu


def _layer_scale_kernel(x_ref, scale_ref, o_ref):
    # Broadcasting multiply in the input dtype; scale_ref is (1, C) for the
    # channel-last path and (1, C, 1) for the channel-first path.
    o_ref[...] = x_ref[...] * scale_ref[...]


def _round_up(a, b):
    return (a + b - 1) // b * b


_VMEM_LIMIT_BYTES = 48 * 1024 * 1024   # safe on v7x (64 MiB phys) and v5e/v6e (128 MiB)
_VMEM_TILE_BUDGET = 32 * 1024 * 1024   # for double-buffered input + output tiles


def layer_scale_forward(x, scale, *, channel_last=True, tm_max=1024):
    """LayerScale forward.

    x:     [*, C] if channel_last else [*, C, T]
    scale: (C,)
    """
    dsize = jnp.dtype(x.dtype).itemsize

    if channel_last:
        C = x.shape[-1]
        assert scale.shape == (C,)
        x2 = x.reshape(-1, C)
        T = x2.shape[0]

        # Tile rows (tokens); double-buffered in + out tiles ~= 4 * tm * C * dsize.
        tm = min(tm_max, max(8, _VMEM_TILE_BUDGET // (4 * C * dsize)))
        tm = max(8, (tm // 8) * 8)
        tm = min(tm, _round_up(T, 8))
        T_pad = _round_up(T, tm)
        if T_pad != T:
            x2 = jnp.pad(x2, ((0, T_pad - T), (0, 0)))

        scale2 = scale.reshape(1, C).astype(x.dtype)

        out = pl.pallas_call(
            _layer_scale_kernel,
            out_shape=jax.ShapeDtypeStruct((T_pad, C), x.dtype),
            grid_spec=pltpu.PrefetchScalarGridSpec(
                num_scalar_prefetch=0,
                grid=(T_pad // tm,),
                in_specs=[
                    pl.BlockSpec((tm, C), lambda i: (i, 0)),   # streaming x tile
                    pl.BlockSpec((1, C), lambda i: (0, 0)),    # resident scale row
                ],
                out_specs=pl.BlockSpec((tm, C), lambda i: (i, 0)),
            ),
            compiler_params=pltpu.CompilerParams(
                dimension_semantics=("parallel",),
                vmem_limit_bytes=_VMEM_LIMIT_BYTES),
        )(x2, scale2)

        if T_pad != T:
            out = out[:T]
        return out.reshape(x.shape)

    # channel_last=False: x is [*, C, T]; broadcast scale along the sublane (C) axis.
    C, Tdim = x.shape[-2], x.shape[-1]
    assert scale.shape == (C,)
    xb = x.reshape(-1, C, Tdim)
    B = xb.shape[0]

    if Tdim <= 128:
        tt = Tdim                                   # full lane extent, no padding
    else:
        tt = max(128, (_VMEM_TILE_BUDGET // (4 * C * dsize)) // 128 * 128)
        tt = min(tt, _round_up(tm_max, 128), _round_up(Tdim, 128))
    T_pad = _round_up(Tdim, tt)
    if T_pad != Tdim:
        xb = jnp.pad(xb, ((0, 0), (0, 0), (0, T_pad - Tdim)))

    scale3 = scale.reshape(1, C, 1).astype(x.dtype)

    out = pl.pallas_call(
        _layer_scale_kernel,
        out_shape=jax.ShapeDtypeStruct((B, C, T_pad), x.dtype),
        grid_spec=pltpu.PrefetchScalarGridSpec(
            num_scalar_prefetch=0,
            grid=(B, T_pad // tt),
            in_specs=[
                pl.BlockSpec((1, C, tt), lambda b, t: (b, 0, t)),
                pl.BlockSpec((1, C, 1), lambda b, t: (0, 0, 0)),
            ],
            out_specs=pl.BlockSpec((1, C, tt), lambda b, t: (b, 0, t)),
        ),
        compiler_params=pltpu.CompilerParams(
            dimension_semantics=("parallel", "parallel"),
            vmem_limit_bytes=_VMEM_LIMIT_BYTES),
    )(xb, scale3)

    if T_pad != Tdim:
        out = out[..., :Tdim]
    return out.reshape(x.shape)


if __name__ == "__main__":
    key = jax.random.PRNGKey(0)
    k1, k2, k3 = jax.random.split(key, 3)

    # ---- channel_last=True (module default): x shaped [batch, seq, channels] ----
    B, S, C = 2, 9, 32          # seq=9 exercises the padded-tail path (18 rows -> 24)
    x_cl = jax.random.normal(k1, (B, S, C), dtype=jnp.float32)
    scale = (jnp.full((C,), 1e-4, dtype=jnp.float32)
             + 0.01 * jax.random.normal(k2, (C,), dtype=jnp.float32))

    y_cl = layer_scale_forward(x_cl, scale, channel_last=True)
    jax.block_until_ready(y_cl)
    ref_cl = scale * x_cl
    assert y_cl.shape == x_cl.shape
    assert jnp.allclose(y_cl, ref_cl, atol=1e-6, rtol=1e-6), "channel_last=True mismatch"

    # ---- channel_last=False: x shaped [batch, channels, time] ----
    Bt, Ct, Tt = 2, 32, 16
    x_cf = jax.random.normal(k3, (Bt, Ct, Tt), dtype=jnp.float32)
    scale_cf = jnp.full((Ct,), 1e-4, dtype=jnp.float32)

    y_cf = layer_scale_forward(x_cf, scale_cf, channel_last=False)
    jax.block_until_ready(y_cf)
    ref_cf = scale_cf[:, None] * x_cf
    assert y_cf.shape == x_cf.shape
    assert jnp.allclose(y_cf, ref_cf, atol=1e-6, rtol=1e-6), "channel_last=False mismatch"

    print("KERNEL_OK")
</pallas_src>

<mosaic_0001>
module attributes {stable_mosaic.version = 11 : i64} {
  func.func @_layer_scale_kernel(%arg0: i32, %arg1: memref<24x32xf32, #tpu.memory_space<vmem>>, %arg2: memref<1x32xf32, #tpu.memory_space<vmem>>, %arg3: memref<24x32xf32, #tpu.memory_space<vmem>>) attributes {dimension_semantics = [#tpu.dimension_semantics<parallel>], iteration_bounds = array<i64: 1>, scalar_prefetch = 0 : i64, scratch_operands = 0 : i64, tpu.core_type = #tpu.core_type<tc>, window_params = [{transform_indices = @transform_0, window_bounds = array<i64: 24, 32>}, {pipeline_mode = #tpu.pipeline_mode<synchronous>, transform_indices = @transform_1, window_bounds = array<i64: 1, 32>}, {transform_indices = @transform_2, window_bounds = array<i64: 24, 32>}]} {
    %c0 = arith.constant 0 : index
    %c0_0 = arith.constant 0 : index
    %0 = vector.load %arg1[%c0, %c0_0] : memref<24x32xf32, #tpu.memory_space<vmem>>, vector<24x32xf32>
    %c0_1 = arith.constant 0 : index
    %c0_2 = arith.constant 0 : index
    %1 = vector.load %arg2[%c0_1, %c0_2] : memref<1x32xf32, #tpu.memory_space<vmem>>, vector<1x32xf32>
    %2 = vector.broadcast %1 : vector<1x32xf32> to vector<24x32xf32>
    %3 = arith.mulf %0, %2 : vector<24x32xf32>
    %c0_3 = arith.constant 0 : index
    %c0_4 = arith.constant 0 : index
    %4 = vector.load %arg3[%c0_3, %c0_4] : memref<24x32xf32, #tpu.memory_space<vmem>>, vector<24x32xf32>
    tpu.vector_store %arg3[%c0_3, %c0_4], %3 {strides = array<i32>} : memref<24x32xf32, #tpu.memory_space<vmem>>, vector<24x32xf32>,
    return
  }
  func.func @transform_0(%arg0: i32) -> (i32, i32) {
    %c0_i32 = arith.constant 0 : i32
    %c0_i32_0 = arith.constant 0 : i32
    return %arg0, %c0_i32 : i32, i32
  }
  func.func @transform_1(%arg0: i32) -> (i32, i32) {
    %c0_i32 = arith.constant 0 : i32
    %c0_i32_0 = arith.constant 0 : i32
    %c0_i32_1 = arith.constant 0 : i32
    return %c0_i32, %c0_i32_0 : i32, i32
  }
  func.func @transform_2(%arg0: i32) -> (i32, i32) {
    %c0_i32 = arith.constant 0 : i32
    %c0_i32_0 = arith.constant 0 : i32
    return %arg0, %c0_i32 : i32, i32
  }
}

</mosaic_0001>

<bundles_post_ra>
// kernel: tpu_custom_call.1
= control target key start
LH: loop header
LB: loop body
LE: loop exit
PB: predicated region body
PF: predicated region fallthrough
CT: control target
= control target key end

     0   :  { %7 = vsyncpa [#allocation3], 0  ;;  %s137_s0 = inlined_call_operand.hbm [shape: f32[24,32], index: 0, kind: input, shape index: {}]   ;;  %s138_s1 = inlined_call_operand.vmem [shape: f32[1,32], index: 1, kind: input, shape index: {}]   ;;  %s139_s2 = inlined_call_operand.hbm [shape: f32[24,32], index: 2, kind: output, shape index: {}]  }
   0x1   :  { %8 = vsyncpa [#allocation4], 0  ;;  %s109_s9 = smov [#allocation2]  }
   0x2   :  { %s14_s10 = sshll.u32 %s109_s9, 4  ;;  %s15_s10 = int_to_ptr.vmem [resolvable:$true] %s14_s10 }
   0x3   :  { %s73_s11 = scalar_lea.vmem %s15_s10, 384  ;;  %p78_p1 = scmp.lt.s32.totalorder %s15_s10, %s15_s10 }
   0x4   :  { %p74_p0 = scmp.ne.s32.totalorder %s15_s10, %s73_s11  ;;  %p79_p2 = scmp.lt.s32.totalorder %s73_s11, %s73_s11 }
   0x6   :  { %p80_p3 = por %p79_p2, %p78_p1 }
   0x8   :  { %p81_p4 = pnand %p80_p3, %p74_p0 }
   0xa   :  { %84 = shalt.err (!%p81_p4)
}
   0xb   :  { %s110_s12 = smov 128   ;;  %s111_s13 = smov 8  }
   0xc   :  { %20 = dma.hbm_to_vmem [thread:$0]  %s137_s0, 384, %s15_s10, [#allocation3], %s110_s12, %s110_s12, %s111_s13  }
   0xd   :  { %105 = dma.done.wait [#allocation3], 384  }
   0xe   :  { %106 = vsyncadd [#allocation3], 4294966912  ;;  %s112_s16 = smov [#allocation5]   ;;  %v26_v0 = vld [vmem:[#allocation2] sm:$0xff]  ;;  %vm39_vm0 = vcmask 261120   ;;  %v27_v2 = vld [vmem:[#allocation2 + $0x8] sm:$0xff] }
   0xf   :  { %s48_s17 = sshll.u32 %s112_s16, 4  ;;  %v60_v1 = vld [vmem:[%s138_s1] ss:$0 sm:$0xff]  ;;  %v28_v5 = vld [vmem:[#allocation2 + $0x10] sm:$0xff]  ;;  %s49_s17 = int_to_ptr.vmem [resolvable:$true] %s48_s17 }
  0x10   :  { %v36_v3 = vmul.f32 %v60_v1, %v26_v0  ;;  %v37_v4 = vmul.f32 %v60_v1, %v27_v2  ;;  %v38_v6 = vmul.f32 %v60_v1, %v28_v5  ;;  %s85_s0 = scalar_lea.vmem %s49_s17, 384  ;;  %p90_p6 = scmp.lt.s32.totalorder %s49_s17, %s49_s17 }
  0x11   :  { %p86_p5 = scmp.ne.s32.totalorder %s49_s17, %s85_s0  ;;  %p91_p7 = scmp.lt.s32.totalorder %s85_s0, %s85_s0 }
  0x12   :  { %40 = vst.msk [vmem:[#allocation5] sm:$0xff] %vm39_vm0, %v36_v3  ;;  %41 = vst.msk [vmem:[#allocation5 + $0x8] sm:$0xff] %vm39_vm0, %v37_v4 }
  0x13   :  { %42 = vst.msk [vmem:[#allocation5 + $0x10] sm:$0xff] %vm39_vm0, %v38_v6  ;;  %p92_p8 = por %p91_p7, %p90_p6 }
  0x15   :  { %p93_p9 = pnand %p92_p8, %p86_p5 }
  0x17   :  { %96 = shalt.err (!%p93_p9)
}
  0x18   :  { %54 = dma.vmem_to_hbm [thread:$0]  %s49_s17, 384, %s139_s2, [#allocation4], %s110_s12, %s110_s12, %s111_s13  }
  0x19   :  { %107 = dma.done.wait [#allocation4], 384  }
  0x1a   :  { %108 = vsyncadd [#allocation4], 4294966912 }
  0x1b   :  { %58 = vsyncpa [#allocation3], 1 }
  0x1c   :  { %59 = vsyncpa [#allocation4], 1 }

</bundles_post_ra>
